<compile_context>
chip_gen: v7x
topology: tpu7x:2x2x1
jax: 0.10.0
libtpu: 0.0.40
codegen_flags: <defaults>
</compile_context>

<pallas_src>
from functools import partial

import jax
import jax.numpy as jnp
from jax.experimental import pallas as pl
from jax.experimental.pallas import tpu as pltpu

DIM_K = 384
SCALE = DIM_K ** (-0.5)

FUSED_BLOCK_CAP = 8 << 20      # per-block byte cap for the fused path (v7x safe)
TILED_BLOCK_TARGET = 4 << 20   # target block bytes for the tiled apply pass
VMEM_CAP = 48 << 20            # never request more than this (headroom on v7x)


# ---------------------------------------------------------------------------
# Fused kernel: per batch, pool + rank-1 attention gate + sigmoid + gate * x.
# Block = (1, c, hw): the whole slab stays resident in VMEM, read/written once.
# ---------------------------------------------------------------------------
def _fused_kernel(scal_ref, x_ref, o_ref):
    alpha = scal_ref[0]            # scale * (wq . wk)
    gamma = scal_ref[1]            # scale * (bq . wk)
    sv = scal_ref[2]               # wv . wd
    sb = scal_ref[3]               # bv . wd + bd

    x = x_ref[0]                                   # (c, hw), native dtype
    c = x.shape[0]
    x32 = x.astype(jnp.float32)

    # Average pool over the spatial (lane) axis, f32 accumulate.
    p_col = jnp.mean(x32, axis=-1, keepdims=True)                  # (c, 1)

    # Lane-oriented copy of the pooled vector without a transpose/reshape:
    # broadcast the column onto a (c, c) grid, keep the diagonal, sum sublanes.
    row_ids = jax.lax.broadcasted_iota(jnp.int32, (c, c), 0)
    col_ids = jax.lax.broadcasted_iota(jnp.int32, (c, c), 1)
    diag = jnp.where(row_ids == col_ids, p_col, jnp.float32(0.0))  # (c, c)
    p_row = jnp.sum(diag, axis=0, keepdims=True)                   # (1, c)

    # softmax over j of logits[i, j] = (alpha * p_i + gamma) * p_j
    # (row-constant terms of the full quadratic form cancel inside softmax)
    # TODO(synk): for very large C, tile the j axis with an online softmax;
    # currently such sizes take the tiled (XLA-gate) fallback path instead.
    t = alpha * p_col + gamma                                      # (c, 1)
    logits = t * p_row                                             # (c, c)
    m = jnp.max(logits, axis=-1, keepdims=True)                    # (c, 1)
    e = jnp.exp(logits - m)                                        # (c, c)
    denom = jnp.sum(e, axis=-1, keepdims=True)                     # (c, 1)
    wsum = jnp.sum(e * p_row, axis=-1, keepdims=True) / denom      # softmax @ p

    gate = jax.nn.sigmoid(sv * wsum + sb)                          # (c, 1) f32

    # Multiply in the feature map's native dtype (bf16 stays bf16).
    o_ref[0] = (gate.astype(x.dtype) * x).astype(o_ref.dtype)


# ---------------------------------------------------------------------------
# Tiled fallback kernel: gate * x on the row-packed (b*c, hw) layout.
# gate block (R, 1) broadcasts along lanes; gate is pre-cast to x.dtype.
# ---------------------------------------------------------------------------
def _apply_gate_kernel(gate_ref, x_ref, o_ref):
    o_ref[...] = (gate_ref[...] * x_ref[...]).astype(o_ref.dtype)


def _rank1_scalars(wq, bq, wk, bk, wv, bv, wd, bd):
    f32 = jnp.float32
    wq_ = wq.reshape(-1).astype(f32)
    bq_ = bq.reshape(-1).astype(f32)
    wk_ = wk.reshape(-1).astype(f32)
    wv_ = wv.reshape(-1).astype(f32)
    bv_ = bv.reshape(-1).astype(f32)
    wd_ = wd.reshape(-1).astype(f32)
    alpha = SCALE * jnp.dot(wq_, wk_)
    gamma = SCALE * jnp.dot(bq_, wk_)
    sv = jnp.dot(wv_, wd_)
    sb = jnp.dot(bv_, wd_) + bd.reshape(()).astype(f32)
    # (bk only contributes row-constant logit terms, which cancel in softmax.)
    return alpha, gamma, sv, sb


def _row_tile(rows, itemsize):
    """Row (sublane) tile: multiple of the packing factor, at most 8 vreg rows."""
    sub = {4: 8, 2: 16, 1: 32}.get(itemsize, 8)
    if rows <= sub:
        return rows                               # full extent (always allowed)
    return min((rows // sub) * sub, 8 * sub)


def _lane_tile(hw, r, itemsize):
    """Lane tile: multiple of 128 aiming at ~4 MiB blocks; ragged edge masked."""
    budget = max(128, (TILED_BLOCK_TARGET // max(1, r * itemsize)) // 128 * 128)
    if hw <= budget:
        return hw                                 # whole spatial extent per step
    return budget


@partial(jax.jit, static_argnames=("force_tiled",))
def seplus_pallas(inputs, wq, bq, wk, bk, wv, bv, wd, bd, force_tiled=False):
    b, c, h, w = inputs.shape
    hw = h * w
    x = inputs.reshape(b, c, hw)                  # stays in native dtype
    itemsize = jnp.dtype(x.dtype).itemsize

    alpha, gamma, sv, sb = _rank1_scalars(wq, bq, wk, bk, wv, bv, wd, bd)

    slab_bytes = c * hw * itemsize
    gate_tmp_bytes = 4 * c * c * 4                # (c,c) f32 temps inside the gate
    fused_need = 4 * slab_bytes + gate_tmp_bytes + (2 << 20)
    use_fused = (not force_tiled) and slab_bytes <= FUSED_BLOCK_CAP \
        and fused_need <= VMEM_CAP

    if use_fused:
        scalars = jnp.stack([alpha, gamma, sv, sb]).astype(jnp.float32)  # -> SMEM
        out = pl.pallas_call(
            _fused_kernel,
            out_shape=jax.ShapeDtypeStruct((b, c, hw), x.dtype),
            grid_spec=pltpu.PrefetchScalarGridSpec(
                num_scalar_prefetch=0,
                grid=(b,),
                in_specs=[
                    pl.BlockSpec(memory_space=pltpu.MemorySpace.SMEM),  # 4 scalars
                    pl.BlockSpec((1, c, hw), lambda i: (i, 0, 0)),      # features
                ],
                out_specs=pl.BlockSpec((1, c, hw), lambda i: (i, 0, 0)),
            ),
            compiler_params=pltpu.CompilerParams(
                dimension_semantics=("parallel",),
                vmem_limit_bytes=int(min(max(fused_need, 16 << 20), VMEM_CAP))),
        )(scalars, x)
        return out.reshape(b, c, h, w)

    # ---------------- tiled fallback (slab too large for VMEM) ----------------
    # Pooling + the tiny rank-1 gate in plain XLA (touches only b*c floats),
    # then a single lane-dense Pallas pass for the HBM-bound gate*x multiply.
    pooled = jnp.mean(x.astype(jnp.float32), axis=-1)               # (b, c)
    t = alpha * pooled + gamma
    logits = t[:, :, None] * pooled[:, None, :]                     # (b, c, c)
    weight = jax.nn.softmax(logits, axis=-1)
    wsum = jnp.einsum("bij,bj->bi", weight, pooled)
    gate = jax.nn.sigmoid(sv * wsum + sb).astype(x.dtype)           # (b, c)

    rows = b * c
    xr = x.reshape(rows, hw)                      # row-packed, contiguous (free)
    gr = gate.reshape(rows, 1)

    r_t = _row_tile(rows, itemsize)
    l_t = _lane_tile(hw, r_t, itemsize)
    n_r = pl.cdiv(rows, r_t)
    n_t = pl.cdiv(hw, l_t)
    block_bytes = r_t * l_t * itemsize
    vmem_need = 4 * block_bytes + 2 * r_t * itemsize + (2 << 20)

    out = pl.pallas_call(
        _apply_gate_kernel,
        out_shape=jax.ShapeDtypeStruct((rows, hw), x.dtype),
        grid_spec=pltpu.PrefetchScalarGridSpec(
            num_scalar_prefetch=0,
            grid=(n_r, n_t),                       # hw innermost: gate not re-DMAed
            in_specs=[
                pl.BlockSpec((r_t, 1), lambda i, j: (i, 0)),         # gate column
                pl.BlockSpec((r_t, l_t), lambda i, j: (i, j)),       # features
            ],
            out_specs=pl.BlockSpec((r_t, l_t), lambda i, j: (i, j)),
        ),
        compiler_params=pltpu.CompilerParams(
            dimension_semantics=("parallel", "parallel"),
            vmem_limit_bytes=int(min(max(vmem_need, 16 << 20), VMEM_CAP))),
    )(gr, xr)
    return out.reshape(b, c, h, w)


def seplus_reference(inputs, wq, bq, wk, bk, wv, bv, wd, bd):
    """Pure-JAX reference with the FULL (non-collapsed) PyTorch math, in f32."""
    b, c, h, w = inputs.shape
    x32 = inputs.astype(jnp.float32)
    pooled = jnp.mean(x32, axis=(2, 3)).reshape(b, c, 1)            # (b, c, 1)
    q = pooled * wq[None] + bq[None]                                # (b, c, K)
    k = pooled * wk[None] + bk[None]
    v = pooled * wv[None] + bv[None]
    scores = jnp.einsum("bik,bjk->bij", q, k) * SCALE
    weight = jax.nn.softmax(scores, axis=-1)
    att = jnp.einsum("bij,bjk->bik", weight, v)                     # (b, c, K)
    down = jnp.einsum("bik,kl->bil", att, wd) + bd.reshape(())      # (b, c, 1)
    gate = jax.nn.sigmoid(down).reshape(b, c, 1, 1)
    return gate * x32


if __name__ == "__main__":
    key = jax.random.PRNGKey(0)
    kx, kq, kbq, kk, kbk, kv, kbv, kd, kbd = jax.random.split(key, 9)

    # Small shapes consistent with SEPlus: NCHW feature map.
    B, C, H, W = 2, 4, 16, 16
    inputs = jax.random.normal(kx, (B, C, H, W), dtype=jnp.float32)

    # nn.Linear(1, 384): weight (384,1) stored transposed as (1,384); bias -> (1,384)
    wq = 0.1 * jax.random.normal(kq, (1, DIM_K), dtype=jnp.float32)
    bq = 0.1 * jax.random.normal(kbq, (1, DIM_K), dtype=jnp.float32)
    wk = 0.1 * jax.random.normal(kk, (1, DIM_K), dtype=jnp.float32)
    bk = 0.1 * jax.random.normal(kbk, (1, DIM_K), dtype=jnp.float32)
    wv = 0.1 * jax.random.normal(kv, (1, DIM_K), dtype=jnp.float32)
    bv = 0.1 * jax.random.normal(kbv, (1, DIM_K), dtype=jnp.float32)
    # nn.Linear(384, 1): weight (1,384) stored transposed as (384,1); bias -> (1,1)
    wd = 0.1 * jax.random.normal(kd, (DIM_K, 1), dtype=jnp.float32)
    bd = 0.1 * jax.random.normal(kbd, (1, 1), dtype=jnp.float32)

    ref = seplus_reference(inputs, wq, bq, wk, bk, wv, bv, wd, bd)

    # f32, fused path (pool + gate + apply in one kernel).
    out = jax.block_until_ready(seplus_pallas(inputs, wq, bq, wk, bk, wv, bv, wd, bd))
    assert out.shape == (B, C, H, W) and out.dtype == jnp.float32
    assert jnp.allclose(out, ref, atol=1e-5, rtol=1e-4), "f32 fused mismatch vs reference"

    # f32, forced tiled fallback path (XLA gate + Pallas apply kernel).
    out_tiled = jax.block_until_ready(
        seplus_pallas(inputs, wq, bq, wk, bk, wv, bv, wd, bd, force_tiled=True))
    assert jnp.allclose(out_tiled, ref, atol=1e-5, rtol=1e-4), "f32 tiled mismatch vs reference"

    # bf16: feature map stays bf16 end-to-end through the fused gating kernel.
    x_bf16 = inputs.astype(jnp.bfloat16)
    out_bf16 = jax.block_until_ready(
        seplus_pallas(x_bf16, wq, bq, wk, bk, wv, bv, wd, bd))
    assert out_bf16.shape == (B, C, H, W) and out_bf16.dtype == jnp.bfloat16
    ref_bf16 = seplus_reference(x_bf16, wq, bq, wk, bk, wv, bv, wd, bd)
    assert jnp.allclose(out_bf16.astype(jnp.float32), ref_bf16,
                        atol=5e-2, rtol=5e-2), "bf16 mismatch vs reference"

    print("KERNEL_OK")
</pallas_src>

<mosaic_0001>
module attributes {stable_mosaic.version = 11 : i64} {
  func.func @_fused_kernel(%arg0: i32, %arg1: memref<4xf32, #tpu.memory_space<smem>>, %arg2: memref<1x4x256xf32, #tpu.memory_space<vmem>>, %arg3: memref<1x4x256xf32, #tpu.memory_space<vmem>>) attributes {dimension_semantics = [#tpu.dimension_semantics<parallel>], iteration_bounds = array<i64: 2>, scalar_prefetch = 0 : i64, scratch_operands = 0 : i64, tpu.core_type = #tpu.core_type<tc>, window_params = [{transform_indices = @transform_0, window_bounds = array<i64: 4>}, {transform_indices = @transform_1, window_bounds = array<i64: 1, 4, 256>}, {transform_indices = @transform_2, window_bounds = array<i64: 1, 4, 256>}]} {
    %c0 = arith.constant 0 : index
    %0 = memref.load %arg1[%c0] : memref<4xf32, #tpu.memory_space<smem>>
    %c1 = arith.constant 1 : index
    %1 = memref.load %arg1[%c1] : memref<4xf32, #tpu.memory_space<smem>>
    %c2 = arith.constant 2 : index
    %2 = memref.load %arg1[%c2] : memref<4xf32, #tpu.memory_space<smem>>
    %c3 = arith.constant 3 : index
    %3 = memref.load %arg1[%c3] : memref<4xf32, #tpu.memory_space<smem>>
    %c0_0 = arith.constant 0 : index
    %c0_1 = arith.constant 0 : index
    %c0_2 = arith.constant 0 : index
    %4 = vector.load %arg2[%c0_0, %c0_1, %c0_2] : memref<1x4x256xf32, #tpu.memory_space<vmem>>, vector<1x4x256xf32>
    %5 = vector.shape_cast %4 : vector<1x4x256xf32> to vector<4x256xf32>
    %cst = arith.constant dense<0.000000e+00> : vector<4xf32>
    %6 = vector.multi_reduction <add>, %5, %cst [1] : vector<4x256xf32> to vector<4xf32>
    %7 = vector.shape_cast %6 : vector<4xf32> to vector<4x1xf32>
    %cst_3 = arith.constant 2.560000e+02 : f32
    %8 = vector.broadcast %cst_3 : f32 to vector<4x1xf32>
    %9 = arith.divf %7, %8 : vector<4x1xf32>
    %10 = tpu.iota {dimensions = array<i32: 0>} : vector<4x4xi32>
    %11 = tpu.iota {dimensions = array<i32: 1>} : vector<4x4xi32>
    %12 = arith.cmpi eq, %10, %11 : vector<4x4xi32>
    %cst_4 = arith.constant 0.000000e+00 : f32
    %13 = vector.shape_cast %9 : vector<4x1xf32> to vector<4x1xf32>
    %14 = vector.broadcast %13 : vector<4x1xf32> to vector<4x4xf32>
    %15 = vector.broadcast %cst_4 : f32 to vector<4x4xf32>
    %16 = arith.select %12, %14, %15 : vector<4x4xi1>, vector<4x4xf32>
    %cst_5 = arith.constant dense<0.000000e+00> : vector<4xf32>
    %17 = vector.multi_reduction <add>, %16, %cst_5 [0] : vector<4x4xf32> to vector<4xf32>
    %18 = vector.shape_cast %17 : vector<4xf32> to vector<1x4xf32>
    %19 = vector.broadcast %0 : f32 to vector<4x1xf32>
    %20 = arith.mulf %19, %9 : vector<4x1xf32>
    %21 = vector.broadcast %1 : f32 to vector<4x1xf32>
    %22 = arith.addf %20, %21 : vector<4x1xf32>
    %23 = vector.broadcast %22 : vector<4x1xf32> to vector<4x4xf32>
    %24 = vector.broadcast %18 : vector<1x4xf32> to vector<4x4xf32>
    %25 = arith.mulf %23, %24 : vector<4x4xf32>
    %cst_6 = arith.constant dense<0xFF800000> : vector<4xf32>
    %26 = vector.multi_reduction <maximumf>, %25, %cst_6 [1] : vector<4x4xf32> to vector<4xf32>
    %27 = vector.shape_cast %26 : vector<4xf32> to vector<4x1xf32>
    %28 = vector.broadcast %27 : vector<4x1xf32> to vector<4x4xf32>
    %29 = arith.subf %25, %28 : vector<4x4xf32>
    %30 = math.exp %29 : vector<4x4xf32>
    %cst_7 = arith.constant dense<0.000000e+00> : vector<4xf32>
    %31 = vector.multi_reduction <add>, %30, %cst_7 [1] : vector<4x4xf32> to vector<4xf32>
    %32 = vector.shape_cast %31 : vector<4xf32> to vector<4x1xf32>
    %33 = vector.broadcast %18 : vector<1x4xf32> to vector<4x4xf32>
    %34 = arith.mulf %30, %33 : vector<4x4xf32>
    %cst_8 = arith.constant dense<0.000000e+00> : vector<4xf32>
    %35 = vector.multi_reduction <add>, %34, %cst_8 [1] : vector<4x4xf32> to vector<4xf32>
    %36 = vector.shape_cast %35 : vector<4xf32> to vector<4x1xf32>
    %37 = arith.divf %36, %32 : vector<4x1xf32>
    %38 = vector.broadcast %2 : f32 to vector<4x1xf32>
    %39 = arith.mulf %38, %37 : vector<4x1xf32>
    %40 = vector.broadcast %3 : f32 to vector<4x1xf32>
    %41 = arith.addf %39, %40 : vector<4x1xf32>
    %42 = arith.negf %41 : vector<4x1xf32>
    %43 = math.exp %42 : vector<4x1xf32>
    %cst_9 = arith.constant 1.000000e+00 : f32
    %44 = vector.broadcast %cst_9 : f32 to vector<4x1xf32>
    %45 = arith.addf %44, %43 : vector<4x1xf32>
    %46 = arith.divf %44, %45 : vector<4x1xf32>
    %47 = vector.broadcast %46 : vector<4x1xf32> to vector<4x256xf32>
    %48 = arith.mulf %47, %5 : vector<4x256xf32>
    %c0_10 = arith.constant 0 : index
    %c0_11 = arith.constant 0 : index
    %c0_12 = arith.constant 0 : index
    %49 = vector.load %arg3[%c0_10, %c0_11, %c0_12] : memref<1x4x256xf32, #tpu.memory_space<vmem>>, vector<1x4x256xf32>
    %50 = vector.shape_cast %49 : vector<1x4x256xf32> to vector<4x256xf32>
    %51 = vector.shape_cast %48 : vector<4x256xf32> to vector<1x4x256xf32>
    tpu.vector_store %arg3[%c0_10, %c0_11, %c0_12], %51 {strides = array<i32>} : memref<1x4x256xf32, #tpu.memory_space<vmem>>, vector<1x4x256xf32>,
    return
  }
  func.func @transform_0(%arg0: i32) -> i32 {
    %c0_i32 = arith.constant 0 : i32
    %c0_i32_0 = arith.constant 0 : i32
    return %c0_i32 : i32
  }
  func.func @transform_1(%arg0: i32) -> (i32, i32, i32) {
    %c0_i32 = arith.constant 0 : i32
    %c0_i32_0 = arith.constant 0 : i32
    %c0_i32_1 = arith.constant 0 : i32
    return %arg0, %c0_i32, %c0_i32_0 : i32, i32, i32
  }
  func.func @transform_2(%arg0: i32) -> (i32, i32, i32) {
    %c0_i32 = arith.constant 0 : i32
    %c0_i32_0 = arith.constant 0 : i32
    %c0_i32_1 = arith.constant 0 : i32
    return %arg0, %c0_i32, %c0_i32_0 : i32, i32, i32
  }
}

</mosaic_0001>

<bundles_post_ra>
// kernel: seplus_pallas.1
= control target key start
LH: loop header
LB: loop body
LE: loop exit
PB: predicated region body
PF: predicated region fallthrough
CT: control target
= control target key end

     0   :  { %7 = vsyncpa [#allocation3], 0  ;;  %s382_s9 = smov 0   ;;  %s424_s0 = inlined_call_operand.vmem [shape: f32[4], index: 0, kind: input, shape index: {}]   ;;  %s425_s1 = inlined_call_operand.vmem [shape: f32[2,4,256], index: 1, kind: input, shape index: {}]   ;;  %s426_s2 = inlined_call_operand.vmem [shape: f32[2,4,256], index: 2, kind: output, shape index: {}]  }
   0x1 LB: > { %s292_s10 = sadd.s32 4294967295, %s364_s9   ;;  %p294_p0 = scmp.ge.s32.totalorder %s364_s9, 1  ;;  %s364_s9 = sphi %s382_s9, %s13_s9  }
   0x2   : > { %p91_p1 = scmp.lt.s32.totalorder %s364_s9, 3  ;;  %s104_s13 = sshll.u32 %s424_s0, 4  ;;  %s105_s13 = int_to_ptr.vmem [resolvable:$true] %s104_s13 }
   0x3   : > { %p319_p3 = scmp.eq.s32.totalorder %s292_s10, 0  ;;  %s339_s15 = scalar_lea.vmem %s105_s13, 16 }
   0x4   : > { %p393_p2 = pnand %p294_p0, %p91_p1  ;;  %p340_p6 = scmp.ne.s32.totalorder %s105_s13, %s339_s15 }
   0x5   : > { %p347_p10 = scmp.lt.s32.totalorder %s105_s13, %s105_s13  ;;  %p348_p11 = scmp.lt.s32.totalorder %s339_s15, %s339_s15 }
   0x6   : > { %p315_p4 = pneg %p393_p2 }
   0x7   : > { %p349_p12 = por %p348_p11, %p347_p10 }
   0x8   : > { %p316_p5 = pnand %p319_p3, %p315_p4 }
   0xa   : > { %p341_p7 = pneg %p316_p5 }
   0xc   : > { %p342_p8 = pnand %p341_p7, %p340_p6 }
   0xe   : > { %p343_p9 = pneg %p342_p8 }
  0x10   : > { %p350_p13 = pnand %p349_p12, %p343_p9 }
  0x12   : > { %353 = shalt.err (!%p350_p13)
}
  0x13   : > { %s366_s16 = smov [#allocation2]   ;;  %125 = sbr.rel (%p393_p2) target bundleno = 549 (0x225), region = 28 }
  0x14   : > { %318 = dma.vmem_to_smem (!%p316_p5), %s105_s13, 16, %s366_s16, [#allocation3]  }
  0x1a   : > { %359 = dma.done.wait (%p319_p3), [#allocation3], 16  }
  0x1b   : > { %361 = vsyncadd (%p319_p3), [#allocation3], 4294967280 }
  0x1c   : > { %131 = sfence }
  0x1d   : > { %p148_p0 = scmp.lt.s32.totalorder %s292_s10, 1  ;;  %vm166_vm0 = vcmask 1043456   ;;  %v174_v5 = vlaneseq  ;;  %s158_s21 = sld [smem:[#allocation2]]  ;;  %vm180_vm2 = vcmask 27648  }
  0x1e   : > { %s303_s22 = sld [smem:[#allocation2 + $0x1]]  ;;  %s304_s23 = sld [smem:[#allocation2 + $0x2]] }
  0x1f   : > { %s429_s10 = smov (!%p148_p0, %s292_s10), 1  ;;  %v175_v6 = vshrl.u32 %v174_v5, 7  ;;  %v177_v7 = vand.u32 127, %v174_v5  ;;  %s305_s24 = sld [smem:[#allocation2 + $0x3]] }
  0x20   : > { %s309_s17 = sshll.u32 %s429_s10, 3 }
  0x21   : > { %s152_s20 = scalar_lea.vmem %s425_s1, %s309_s17  ;;  %vm178_vm1 = vcmp.eq.s32.totalorder %v175_v6, %v177_v7  ;;  %s157_s27 = scalar_lea.vmem %s426_s2, %s309_s17 }
  0x22   : > { %v162_v0 = vld [vmem:[%s152_s20] sm:$0xff] }
  0x23   : > { %v164_v1 = vcombine.high %v162_v0, %v162_v0  ;;  %v167_v2 = vsel %vm166_vm0, %v162_v0, 0.0  ;;  %v188_v14 = vstv %s158_s21 }
  0x24   : > { %v190_v18 = vstv %s303_s22  ;;  %v208_v33 = vstv %s304_s23 }
  0x25   : > { %v168_v3 = vsel %vm166_vm0, %v164_v1, 0.0  ;;  %v210_v36 = vstv %s305_s24 }
  0x26   : > { %v169_v4 = vadd.f32 %v168_v3, %v167_v2 }
  0x28   : > { %170 = vadd.xlane.f32.xlu0 %v169_v4 }
  0xb5   : > { %v171_v8 = vpop.xlane.xlu0 %170 }
  0xb6   : > { %v173_v9 = vmul.f32 0.00390625, %v171_v8 }
  0xb8   : > { %v179_v10 = vsel %vm178_vm1, %v173_v9, 0.0  ;;  %v189_v16 = vmul.f32 %v188_v14, %v173_v9 }
  0xb9   : > { %v181_v11 = vsel %vm180_vm2, %v179_v10, 0.0 }
  0xba   : > { %v182_v12 = vrot.slane %v181_v11, 4  ;;  %v191_v21 = vadd.f32 %v190_v18, %v189_v16 }
  0xbc   : > { %v183_v13 = vadd.f32 %v182_v12, %v181_v11 }
  0xbe   : > { %v184_v15 = vrot.slane %v183_v13, 2 }
  0xc0   : > { %v185_v17 = vadd.f32 %v184_v15, %v183_v13 }
  0xc2   : > { %v186_v19 = vrot.slane %v185_v17, 1 }
  0xc4   : > { %v187_v20 = vadd.f32 %v186_v19, %v185_v17 }
  0xc6   : > { %v192_v22 = vmul.f32 %v191_v21, %v187_v20 }
  0xc8   : > { %v193_v23 = vsel %vm180_vm2, %v192_v22, -inf }
  0xc9   : > { %194 = vmax.xlane.f32.xlu0 %v193_v23 }
 0x156   : > { %v195_v24 = vpop.xlane.xlu0 %194 }
 0x157   : > { %v196_v25 = vsub.f32 %v192_v22, %v195_v24 }
 0x159   : > { %v197_v26 = vmul.f32 1.442695, %v196_v25 }
 0x15b   : > { %331 = vpow2.f32 %v197_v26 }
 0x165   : > { %v332_v27 = vpop.eup %331 }
 0x166   : > { %v199_v28 = vsel %vm180_vm2, %v332_v27, 0.0  ;;  %v202_v29 = vmul.f32 %v332_v27, %v187_v20 }
 0x167   : > { %200 = vadd.xlane.f32.xlu1 %v199_v28 }
 0x168   : > { %v203_v30 = vsel %vm180_vm2, %v202_v29, 0.0 }
 0x16b   : > { %204 = vadd.xlane.f32.xlu1 %v203_v30 }
 0x1f4   : > { %v201_v31 = vpop.xlane.xlu1 %200 }
 0x1f5   : > { %333 = vrcp.f32 %v201_v31 }
 0x1f8   : > { %v205_v34 = vpop.xlane.xlu1 %204 }
 0x1ff   : > { %v334_v32 = vpop.eup %333 }
 0x200   : > { %v207_v35 = vmul.f32 %v334_v32, %v205_v34 }
 0x202   : > { %v209_v37 = vmul.f32 %v208_v33, %v207_v35 }
 0x204   : > { %v211_v38 = vadd.f32 %v210_v36, %v209_v37 }
 0x206   : > { %v306_v39 = vmul.f32 -1.442695, %v211_v38 }
 0x208   : > { %335 = vpow2.f32 %v306_v39 }
 0x212   : > { %v336_v40 = vpop.eup %335 }
 0x213   : > { %v215_v41 = vadd.f32 1.0, %v336_v40 }
 0x215   : > { %337 = vrcp.f32 %v215_v41 }
 0x21f   : > { %v338_v42 = vpop.eup %337 }
 0x220   : > { %v218_v43 = vmul.f32 %v338_v42, %v162_v0  ;;  %v219_v44 = vmul.f32 %v338_v42, %v164_v1 }
 0x222   : > { %v222_v45 = vcombine.low %v218_v43, %v219_v44 }
 0x224   : > { %224 = vst [vmem:[%s157_s27] sm:$0xff] %v222_v45 }
 0x225 PF: > { %s13_s9 = sadd.s32 1, %s364_s9  }
 0x226   : > { %p10_p1 = scmp.ge.s32.totalorder %s13_s9, 4  }
 0x228   :  { %12 = sbr.rel (!%p10_p1) target bundleno = 1 (0x1), region = 63 }
 0x22f   :  { %246 = vsyncpa [#allocation3], 1 }
 0x230   :  { %248 = vsyncpa [#allocation3 + $0x1], 1 }

</bundles_post_ra>
